<compile_context>
chip_gen: v6e
topology: v6e:2x2x1
jax: 0.10.0
libtpu: 0.0.40
codegen_flags: <defaults>
</compile_context>

<pallas_src>
import functools

import jax
import jax.numpy as jnp
from jax.experimental import pallas as pl
from jax.experimental.pallas import tpu as pltpu

_EPS = 1e-5


def _round_up(n, m):
    return -(-n // m) * m


# ---------------------------------------------------------------------------
# Kernel: for each batch element in the block, out[b] = W_folded @ x[b] + shift
# (fp32 accumulate, resident weight/shift).
# ---------------------------------------------------------------------------
def _mapping_kernel(w_ref, s_ref, x_ref, o_ref):
    # w_ref: (C_out, C_in)      compute dtype, BN scale folded in (VMEM-resident)
    # s_ref: (C_out, 1)         fp32 BN shift = beta - mean * scale (resident)
    # x_ref: (Bt, C_in, HW_t)   compute dtype
    # o_ref: (Bt, C_out, HW_t)  output dtype
    w = w_ref[...]
    s = s_ref[...]
    for b in range(x_ref.shape[0]):            # Bt is a small static constant
        acc = jnp.dot(w, x_ref[b], preferred_element_type=jnp.float32)
        o_ref[b] = (acc + s).astype(o_ref.dtype)


def mapping_forward(x, w, bn, *, use_bf16=True, hw_block=8192,
                    out_dtype=jnp.float32):
    """y = BatchNorm2d(Conv2d(x, w, kernel=1, stride=1, bias=False)), eval BN.

    x:  (B, C_in, H, W)  NCHW (PyTorch convention)
    w:  (C_out, C_in, 1, 1)
    bn: (gamma, beta, running_mean, running_var)
    returns: (B, C_out, H, W) in `out_dtype` (fp32 default).
    """
    gamma, beta, mean, var = bn
    scale = gamma / jnp.sqrt(var + _EPS)
    shift = beta - mean * scale

    B, C_in, H, W = x.shape
    C_out = w.shape[0]
    HW = H * W

    cdt = jnp.bfloat16 if use_bf16 else jnp.float32
    # Fold BN scale into the conv weight in fp32, then cast to compute dtype.
    w_mat = (w.reshape(C_out, C_in).astype(jnp.float32)
             * scale[:, None]).astype(cdt)
    shift2 = shift.reshape(C_out, 1).astype(jnp.float32)

    # Channels-first flat layout: free reshape, spatial axis on the lane dim,
    # so there are no NCHW<->NHWC transposes and stores are lane-dense.
    x3 = x.reshape(B, C_in, HW).astype(cdt)

    # Lane-dense output stores: pad the spatial axis to a multiple of 128 when
    # needed (cheap wrapper pad; sliced off again below).
    HW_pad = _round_up(HW, 128)
    if HW_pad != HW:
        x3 = jnp.pad(x3, ((0, 0), (0, 0), (0, HW_pad - HW)))

    hw_block = max(128, (hw_block // 128) * 128)
    if HW_pad > hw_block:
        # Large spatial extent: tile the lane axis, one batch per step.
        hw_tile, bt = hw_block, 1
    else:
        # Small spatial extent: whole spatial axis in one block, and pack
        # several batch elements per grid step to amortize the ~0.35 us
        # per-step pipeline overhead (launch-bound regime).
        hw_tile = HW_pad
        bt = min(B, max(1, hw_block // HW_pad))

    grid_b = pl.cdiv(B, bt)
    grid_hw = pl.cdiv(HW_pad, hw_tile)

    # v7x has two TensorCores: a single-batch call that fits in one step would
    # leave one core idle, so split the spatial axis into two lane tiles.
    if grid_b * grid_hw == 1 and B == 1 and HW_pad >= 256:
        hw_tile = _round_up(HW_pad // 2, 128)
        grid_hw = pl.cdiv(HW_pad, hw_tile)

    # Note: partial boundary blocks (B % bt != 0 or HW_pad % hw_tile != 0) are
    # safe: each output column depends only on its own input column, and
    # out-of-range output columns are dropped on writeback.
    out = pl.pallas_call(
        _mapping_kernel,
        out_shape=jax.ShapeDtypeStruct((B, C_out, HW_pad), out_dtype),
        grid=(grid_b, grid_hw),
        in_specs=[
            pl.BlockSpec((C_out, C_in), lambda i, j: (0, 0)),   # resident weight
            pl.BlockSpec((C_out, 1), lambda i, j: (0, 0)),      # resident shift
            pl.BlockSpec((bt, C_in, hw_tile), lambda i, j: (i, 0, j)),
        ],
        out_specs=pl.BlockSpec((bt, C_out, hw_tile), lambda i, j: (i, 0, j)),
        compiler_params=pltpu.CompilerParams(
            dimension_semantics=("parallel", "parallel")),
    )(w_mat, shift2, x3)

    if HW_pad != HW:
        out = out[:, :, :HW]
    return out.reshape(B, C_out, H, W)


# ---------------------------------------------------------------------------
# Reference (pure JAX): operands quantized to `compute_dtype`, fp32 math.
# ---------------------------------------------------------------------------
def _reference(x, w, bn, compute_dtype):
    gamma, beta, mean, var = bn
    scale = gamma / jnp.sqrt(var + _EPS)
    shift = beta - mean * scale
    C_out, C_in = w.shape[0], w.shape[1]
    w_q = (w.reshape(C_out, C_in).astype(jnp.float32) * scale[:, None]
           ).astype(compute_dtype).astype(jnp.float32)
    x_q = x.astype(compute_dtype).astype(jnp.float32)
    y = jnp.einsum("oc,bchw->bohw", w_q, x_q,
                   precision=jax.lax.Precision.HIGHEST)
    return y + shift[None, :, None, None]


# ---------------------------------------------------------------------------
if __name__ == "__main__":

    def run_case(key, B, C_in, C_out, H, W, use_bf16, tol):
        k = jax.random.split(key, 6)
        x = jax.random.normal(k[0], (B, C_in, H, W), jnp.float32)
        w = 0.1 * jax.random.normal(k[1], (C_out, C_in, 1, 1), jnp.float32)
        gamma = 1.0 + 0.1 * jax.random.normal(k[2], (C_out,), jnp.float32)
        beta = 0.1 * jax.random.normal(k[3], (C_out,), jnp.float32)
        mean = 0.1 * jax.random.normal(k[4], (C_out,), jnp.float32)
        var = 0.5 + jax.random.uniform(k[5], (C_out,), jnp.float32)
        bn = (gamma, beta, mean, var)

        fwd = jax.jit(functools.partial(mapping_forward, use_bf16=use_bf16))
        y = jax.block_until_ready(fwd(x, w, bn))

        cdt = jnp.bfloat16 if use_bf16 else jnp.float32
        ref = _reference(x, w, bn, cdt)

        assert y.shape == (B, C_out, H, W)
        assert bool(jnp.all(jnp.isfinite(y)))
        err = float(jnp.max(jnp.abs(y.astype(jnp.float32) - ref)))
        assert err < tol, f"max abs error {err} >= {tol}"

    root = jax.random.PRNGKey(0)
    k1, k2, k3 = jax.random.split(root, 3)

    # Houston-like: 48 input bands -> 100-dim embedding over 2 patches of
    # 16x16 pixels (HW = 256, lane-dense; both batches packed into one step).
    run_case(k1, 2, 48, 100, 16, 16, use_bf16=True, tol=1e-3)

    # fp32 path vs the exact fp32 reference (loose-ish tolerance only to bound
    # MXU f32 pass precision; any real layout/BN-fold bug gives O(1) errors).
    run_case(k2, 2, 48, 100, 16, 16, use_bf16=False, tol=1e-2)

    # Non-128-multiple spatial extent (HW=400 padded to 512) with B == 1, so
    # the spatial axis is split into two lane tiles (v7x two-TensorCore path).
    run_case(k3, 1, 16, 24, 20, 20, use_bf16=False, tol=1e-2)

    print("KERNEL_OK")
</pallas_src>

<mosaic_0001>
module attributes {stable_mosaic.version = 11 : i64} {
  func.func @_mapping_kernel(%arg0: i32, %arg1: i32, %arg2: memref<100x48xbf16, #tpu.memory_space<vmem>>, %arg3: memref<100x1xf32, #tpu.memory_space<vmem>>, %arg4: memref<2x48x256xbf16, #tpu.memory_space<vmem>>, %arg5: memref<2x100x256xf32, #tpu.memory_space<vmem>>) attributes {dimension_semantics = [#tpu.dimension_semantics<parallel>, #tpu.dimension_semantics<parallel>], iteration_bounds = array<i64: 1, 1>, scalar_prefetch = 0 : i64, scratch_operands = 0 : i64, tpu.core_type = #tpu.core_type<tc>, window_params = [{pipeline_mode = #tpu.pipeline_mode<synchronous>, transform_indices = @transform_0, window_bounds = array<i64: 100, 48>}, {pipeline_mode = #tpu.pipeline_mode<synchronous>, transform_indices = @transform_1, window_bounds = array<i64: 100, 1>}, {transform_indices = @transform_2, window_bounds = array<i64: 2, 48, 256>}, {transform_indices = @transform_3, window_bounds = array<i64: 2, 100, 256>}]} {
    %c0 = arith.constant 0 : index
    %c0_0 = arith.constant 0 : index
    %0 = vector.load %arg2[%c0, %c0_0] : memref<100x48xbf16, #tpu.memory_space<vmem>>, vector<100x48xbf16>
    %c0_1 = arith.constant 0 : index
    %c0_2 = arith.constant 0 : index
    %1 = vector.load %arg3[%c0_1, %c0_2] : memref<100x1xf32, #tpu.memory_space<vmem>>, vector<100x1xf32>
    %c0_3 = arith.constant 0 : index
    %c0_4 = arith.constant 0 : index
    %c0_5 = arith.constant 0 : index
    %2 = vector.load %arg4[%c0_3, %c0_4, %c0_5] : memref<2x48x256xbf16, #tpu.memory_space<vmem>>, vector<1x48x256xbf16>
    %3 = vector.shape_cast %2 : vector<1x48x256xbf16> to vector<48x256xbf16>
    %cst = arith.constant dense<0.000000e+00> : vector<100x256xf32>
    %4 = tpu.matmul %0, %3, %cst {dimension_numbers = #tpu.dot_dimension_numbers<[1], [0], [0], [1], [0, 0, 1, 1], [], []>} : vector<100x48xbf16>, vector<48x256xbf16>, vector<100x256xf32> -> vector<100x256xf32>
    %5 = vector.broadcast %1 : vector<100x1xf32> to vector<100x256xf32>
    %6 = arith.addf %4, %5 : vector<100x256xf32>
    %c0_6 = arith.constant 0 : index
    %c0_7 = arith.constant 0 : index
    %c0_8 = arith.constant 0 : index
    %7 = vector.load %arg5[%c0_6, %c0_7, %c0_8] : memref<2x100x256xf32, #tpu.memory_space<vmem>>, vector<1x100x256xf32>
    %8 = vector.shape_cast %7 : vector<1x100x256xf32> to vector<100x256xf32>
    %9 = vector.shape_cast %6 : vector<100x256xf32> to vector<1x100x256xf32>
    tpu.vector_store %arg5[%c0_6, %c0_7, %c0_8], %9 {strides = array<i32>} : memref<2x100x256xf32, #tpu.memory_space<vmem>>, vector<1x100x256xf32>,
    %c1 = arith.constant 1 : index
    %c0_9 = arith.constant 0 : index
    %c0_10 = arith.constant 0 : index
    %10 = vector.load %arg4[%c1, %c0_9, %c0_10] : memref<2x48x256xbf16, #tpu.memory_space<vmem>>, vector<1x48x256xbf16>
    %11 = vector.shape_cast %10 : vector<1x48x256xbf16> to vector<48x256xbf16>
    %cst_11 = arith.constant dense<0.000000e+00> : vector<100x256xf32>
    %12 = tpu.matmul %0, %11, %cst_11 {dimension_numbers = #tpu.dot_dimension_numbers<[1], [0], [0], [1], [0, 0, 1, 1], [], []>} : vector<100x48xbf16>, vector<48x256xbf16>, vector<100x256xf32> -> vector<100x256xf32>
    %13 = vector.broadcast %1 : vector<100x1xf32> to vector<100x256xf32>
    %14 = arith.addf %12, %13 : vector<100x256xf32>
    %c1_12 = arith.constant 1 : index
    %c0_13 = arith.constant 0 : index
    %c0_14 = arith.constant 0 : index
    %15 = vector.load %arg5[%c1_12, %c0_13, %c0_14] : memref<2x100x256xf32, #tpu.memory_space<vmem>>, vector<1x100x256xf32>
    %16 = vector.shape_cast %15 : vector<1x100x256xf32> to vector<100x256xf32>
    %17 = vector.shape_cast %14 : vector<100x256xf32> to vector<1x100x256xf32>
    tpu.vector_store %arg5[%c1_12, %c0_13, %c0_14], %17 {strides = array<i32>} : memref<2x100x256xf32, #tpu.memory_space<vmem>>, vector<1x100x256xf32>,
    return
  }
  func.func @transform_0(%arg0: i32, %arg1: i32) -> (i32, i32) {
    %c0_i32 = arith.constant 0 : i32
    %c0_i32_0 = arith.constant 0 : i32
    %c0_i32_1 = arith.constant 0 : i32
    return %c0_i32, %c0_i32_0 : i32, i32
  }
  func.func @transform_1(%arg0: i32, %arg1: i32) -> (i32, i32) {
    %c0_i32 = arith.constant 0 : i32
    %c0_i32_0 = arith.constant 0 : i32
    %c0_i32_1 = arith.constant 0 : i32
    return %c0_i32, %c0_i32_0 : i32, i32
  }
  func.func @transform_2(%arg0: i32, %arg1: i32) -> (i32, i32, i32) {
    %c0_i32 = arith.constant 0 : i32
    %c0_i32_0 = arith.constant 0 : i32
    return %arg0, %c0_i32, %arg1 : i32, i32, i32
  }
  func.func @transform_3(%arg0: i32, %arg1: i32) -> (i32, i32, i32) {
    %c0_i32 = arith.constant 0 : i32
    %c0_i32_0 = arith.constant 0 : i32
    return %arg0, %c0_i32, %arg1 : i32, i32, i32
  }
}

</mosaic_0001>

<bundles_post_ra>
// kernel: mapping_forward.1
= control target key start
LH: loop header
LB: loop body
LE: loop exit
PB: predicated region body
PF: predicated region fallthrough
CT: control target
= control target key end

     0   :  { %v586_v1 = vmov 0   ;;  %vm175_vm0 = vcmask 392192   ;;  %s889_s2 = inlined_call_operand.vmem [shape: bf16[2,48,256], index: 2, kind: input, shape index: {}]   ;;  %s890_s0 = inlined_call_operand.vmem [shape: bf16[100,48], index: 0, kind: input, shape index: {}]   ;;  %s891_s1 = inlined_call_operand.vmem [shape: f32[100,1], index: 1, kind: input, shape index: {}]   ;;  %s892_s3 = inlined_call_operand.vmem [shape: f32[2,100,256], index: 3, kind: output, shape index: {}]  }
   0x1   :  { %v561_v0 = vld [vmem:[%s889_s2 + $0x24] ss:$8 sps:$4 sm:$0xff]   ;;  %229 = vmatprep.mubr.bf16.mxu0 %v586_v1  ;;  %393 = vmatprep.mubr.bf16.mxu1 %v586_v1  ;;  %v563_v2 = vld [vmem:[%s889_s2 + $0x54] ss:$8 sps:$4 sm:$0xff]   ;;  %v565_v3 = vld [vmem:[%s889_s2 + $0x20] ss:$8 sps:$4 sm:$0xff]  }
   0x2   :  { %559 = vset.pattern.permute.xlu0 %v586_v1  ;;  %560 = vset.pattern.permute.xlu1 %v586_v1  ;;  %v566_v4 = vld [vmem:[%s889_s2 + $0x50] ss:$8 sps:$4 sm:$0xff]   ;;  %v567_v5 = vld [vmem:[%s889_s2 + $0x14] ss:$8 sps:$4 sm:$0xff]   ;;  %v569_v6 = vld [vmem:[%s889_s2 + $0x44] ss:$8 sps:$4 sm:$0xff]  }
   0x3   :  { %207 = vmatprep.subr.bf16.mxu0 %v561_v0  ;;  %371 = vmatprep.subr.bf16.mxu1 %v563_v2  ;;  %v571_v7 = vld [vmem:[%s889_s2 + $0x10] ss:$8 sps:$4 sm:$0xff]   ;;  %v572_v8 = vld [vmem:[%s889_s2 + $0x40] ss:$8 sps:$4 sm:$0xff]   ;;  %v573_v9 = vld [vmem:[%s889_s2 + $0x4] ss:$8 sps:$4 sm:$0xff]  }
   0x4   :  { %208 = vmatpush1.bf16.msra.mxu0 %v565_v3  ;;  %372 = vmatpush1.bf16.msra.mxu1 %v566_v4  ;;  %v575_v10 = vld [vmem:[%s889_s2 + $0x34] ss:$8 sps:$4 sm:$0xff]   ;;  %v577_v11 = vld [vmem:[%s889_s2] ss:$8 sps:$4 sm:$0xff]   ;;  %v578_v12 = vld [vmem:[%s889_s2 + $0x30] ss:$8 sps:$4 sm:$0xff]  }
   0x5   :  { %209 = vmatprep.subr.bf16.mxu0 %v567_v5  ;;  %373 = vmatprep.subr.bf16.mxu1 %v569_v6  ;;  %v579_v13 = vld [vmem:[%s890_s0] sm:$0xff]   ;;  %v30_v15 = vld [vmem:[%s891_s1 + $0x10] sm:$0xff]  ;;  %v29_v16 = vld [vmem:[%s891_s1 + $0x8] sm:$0xff] }
   0x6   :  { %v28_v14 = vld [vmem:[%s891_s1] sm:$0xff]  ;;  %59 = vperm.xlu1 %560, %v30_v15   ;;  %v31_v17 = vld [vmem:[%s891_s1 + $0x18] sm:$0xff]  ;;  %v580_v18 = vld [vmem:[%s890_s0 + $0x8] sm:$0xff]  }
   0x7   :  { %49 = vperm.xlu0 %559, %v28_v14   ;;  %v32_v19 = vld [vmem:[%s891_s1 + $0x20] sm:$0xff]  ;;  %v33_v20 = vld [vmem:[%s891_s1 + $0x28] sm:$0xff]  ;;  %v34_v21 = vld [vmem:[%s891_s1 + $0x30] sm:$0xff] }
   0x8   :  { %210 = vmatpush1.bf16.msra.mxu0 %v571_v7  ;;  %374 = vmatpush1.bf16.msra.mxu1 %v572_v8  ;;  %v35_v22 = vld [vmem:[%s891_s1 + $0x38] sm:$0xff]  ;;  %v581_v23 = vld [vmem:[%s890_s0 + $0x10] sm:$0xff]   ;;  %v36_v24 = vld [vmem:[%s891_s1 + $0x40] sm:$0xff] }
   0x9   :  { %211 = vmatprep.subr.bf16.mxu0 %v573_v9  ;;  %375 = vmatprep.subr.bf16.mxu1 %v575_v10  ;;  %v37_v25 = vld [vmem:[%s891_s1 + $0x48] sm:$0xff]  ;;  %v38_v26 = vld [vmem:[%s891_s1 + $0x50] sm:$0xff]  ;;  %v39_v27 = vld [vmem:[%s891_s1 + $0x58] sm:$0xff] }
   0xa   :  { %64 = vperm.xlu1 %560, %v31_v17   ;;  %v582_v28 = vld [vmem:[%s890_s0 + $0x18] sm:$0xff]   ;;  %v40_v29 = vld [vmem:[%s891_s1 + $0x60] sm:$0xf]  ;;  %v584_v31 = vld [vmem:[%s890_s0 + $0x28] sm:$0xff]  }
   0xb   :  { %54 = vperm.xlu0 %559, %v29_v16   ;;  %v583_v30 = vld [vmem:[%s890_s0 + $0x20] sm:$0xff]   ;;  %v585_v32 = vld [vmem:[%s890_s0 + $0x30] ss:$0 sps:$4 sm:$0x33]  }
   0xc   :  { %212 = vmatpush1.bf16.msra.mxu0 %v577_v11  ;;  %376 = vmatpush1.bf16.msra.mxu1 %v578_v12 }
   0xe   :  { %74 = vperm.xlu1 %560, %v33_v20  }
   0xf   :  { %506 = vmatmul.mubr.msk.bf16.vlgmr.msra.gmra.mxu0 %vm175_vm0, %v579_v13  ;;  %525 = vmatmul.mubr.msk.bf16.vlgmr.msra.gmra.mxu1 %vm175_vm0, %v579_v13 }
  0x10   :  { %239 = vmatprep.mubr.bf16.mxu0 %v586_v1  ;;  %403 = vmatprep.mubr.bf16.mxu1 %v586_v1 }
  0x11   :  { %69 = vperm.xlu0 %559, %v32_v19  }
  0x12   :  { %84 = vperm.xlu1 %560, %v35_v22  }
  0x15   :  { %79 = vperm.xlu0 %559, %v34_v21  }
  0x16   :  { %94 = vperm.xlu1 %560, %v37_v25  }
  0x17   :  { %507 = vmatmul.mubr.msk.bf16.gmra.mxu0 %vm175_vm0, %v580_v18  ;;  %526 = vmatmul.mubr.msk.bf16.gmra.mxu1 %vm175_vm0, %v580_v18 }
  0x18   :  { %249 = vmatprep.mubr.bf16.mxu0 %v586_v1  ;;  %413 = vmatprep.mubr.bf16.mxu1 %v586_v1 }
  0x19   :  { %89 = vperm.xlu0 %559, %v36_v24  }
  0x1a   :  { %104 = vperm.xlu1 %560, %v39_v27  }
  0x1d   :  { %99 = vperm.xlu0 %559, %v38_v26  }
  0x1f   :  { %508 = vmatmul.mubr.msk.bf16.gmra.mxu0 %vm175_vm0, %v581_v23  ;;  %527 = vmatmul.mubr.msk.bf16.gmra.mxu1 %vm175_vm0, %v581_v23 }
  0x20   :  { %259 = vmatprep.mubr.bf16.mxu0 %v586_v1  ;;  %423 = vmatprep.mubr.bf16.mxu1 %v586_v1 }
  0x21   :  { %109 = vperm.xlu0 %559, %v40_v29  }
  0x27   :  { %509 = vmatmul.mubr.msk.bf16.gmra.mxu0 %vm175_vm0, %v582_v28  ;;  %528 = vmatmul.mubr.msk.bf16.gmra.mxu1 %vm175_vm0, %v582_v28 }
  0x28   :  { %269 = vmatprep.mubr.bf16.mxu0 %v586_v1  ;;  %433 = vmatprep.mubr.bf16.mxu1 %v586_v1 }
  0x2f   :  { %510 = vmatmul.mubr.msk.bf16.gmra.mxu0 %vm175_vm0, %v583_v30  ;;  %529 = vmatmul.mubr.msk.bf16.gmra.mxu1 %vm175_vm0, %v583_v30 }
  0x30   :  { %279 = vmatprep.mubr.bf16.mxu0 %v586_v1  ;;  %443 = vmatprep.mubr.bf16.mxu1 %v586_v1 }
  0x37   :  { %511 = vmatmul.mubr.msk.bf16.gmra.mxu0 %vm175_vm0, %v584_v31  ;;  %530 = vmatmul.mubr.msk.bf16.gmra.mxu1 %vm175_vm0, %v584_v31 }
  0x38   :  { %289 = vmatprep.mubr.bf16.mxu0 %v586_v1  ;;  %453 = vmatprep.mubr.bf16.mxu1 %v586_v1 }
  0x3f   :  { %512 = vmatmul.mubr.msk.bf16.gmra.mxu0 %vm175_vm0, %v585_v32  ;;  %531 = vmatmul.mubr.msk.bf16.gmra.mxu1 %vm175_vm0, %v585_v32 }
  0x81   :  { %v60_v43 = vpop.permute.xlu1 %59 }
  0x82   :  { %v50_v33 = vpop.permute.xlu0 %49 }
  0x85   :  { %v65_v56 = vpop.permute.xlu1 %64 }
  0x86   :  { %v55_v38 = vpop.permute.xlu0 %54 }
  0x89   :  { %v75_v10 = vpop.permute.xlu1 %74 }
  0x8c   :  { %v70_v3 = vpop.permute.xlu0 %69 }
  0x8d   :  { %v85_v30 = vpop.permute.xlu1 %84 }
  0x90   :  { %v80_v21 = vpop.permute.xlu0 %79 }
  0xcf   :  { %v231_v34 = vpop.f32.mrf.mxu0  ;;  %v395_v35 = vpop.f32.mrf.mxu1 }
  0xd0   :  { %v232_v36 = vadd.f32 %v231_v34, %v50_v33  ;;  %v396_v37 = vadd.f32 %v395_v35, %v50_v33 }
  0xd1   :  { %v233_v39 = vpop.f32.mrf.mxu0  ;;  %v397_v40 = vpop.f32.mrf.mxu1 }
  0xd2   :  { %298 = vst [vmem:[%s892_s3] sm:$0xff] %v232_v36  ;;  %532 = vst [vmem:[%s892_s3 + $0xd0] sm:$0xff] %v396_v37  ;;  %v234_v41 = vadd.f32 %v233_v39, %v50_v33  ;;  %v398_v42 = vadd.f32 %v397_v40, %v50_v33  ;;  %v90_v39 = vpop.permute.xlu0 %89 }
  0xd3   :  { %v235_v44 = vpop.f32.mrf.mxu0  ;;  %v399_v45 = vpop.f32.mrf.mxu1 }
  0xd4   :  { %299 = vst [vmem:[%s892_s3 + $0x8] sm:$0xff] %v234_v41  ;;  %533 = vst [vmem:[%s892_s3 + $0xd8] sm:$0xff] %v398_v42  ;;  %v236_v46 = vadd.f32 %v235_v44, %v55_v38  ;;  %v400_v47 = vadd.f32 %v399_v45, %v55_v38 }
  0xd5   :  { %v237_v48 = vpop.f32.mrf.mxu0  ;;  %v401_v49 = vpop.f32.mrf.mxu1 }
  0xd6   :  { %300 = vst [vmem:[%s892_s3 + $0x10] sm:$0xff] %v236_v46  ;;  %534 = vst [vmem:[%s892_s3 + $0xe0] sm:$0xff] %v400_v47  ;;  %v238_v50 = vadd.f32 %v237_v48, %v55_v38  ;;  %v402_v51 = vadd.f32 %v401_v49, %v55_v38  ;;  %v95_v48 = vpop.permute.xlu1 %94 }
  0xd7   :  { %v241_v52 = vpop.f32.mrf.mxu0  ;;  %v405_v53 = vpop.f32.mrf.mxu1 }
  0xd8   :  { %301 = vst [vmem:[%s892_s3 + $0x18] sm:$0xff] %v238_v50  ;;  %535 = vst [vmem:[%s892_s3 + $0xe8] sm:$0xff] %v402_v51  ;;  %v242_v54 = vadd.f32 %v241_v52, %v60_v43  ;;  %v406_v55 = vadd.f32 %v405_v53, %v60_v43 }
  0xd9   :  { %v243_v57 = vpop.f32.mrf.mxu0  ;;  %v407_v58 = vpop.f32.mrf.mxu1 }
  0xda   :  { %302 = vst [vmem:[%s892_s3 + $0x20] sm:$0xff] %v242_v54  ;;  %536 = vst [vmem:[%s892_s3 + $0xf0] sm:$0xff] %v406_v55  ;;  %v244_v59 = vadd.f32 %v243_v57, %v60_v43  ;;  %v408_v60 = vadd.f32 %v407_v58, %v60_v43  ;;  %v100_v57 = vpop.permute.xlu0 %99 }
  0xdb   :  { %v245_v61 = vpop.f32.mrf.mxu0  ;;  %v409_v62 = vpop.f32.mrf.mxu1 }
  0xdc   :  { %303 = vst [vmem:[%s892_s3 + $0x28] sm:$0xff] %v244_v59  ;;  %537 = vst [vmem:[%s892_s3 + $0xf8] sm:$0xff] %v408_v60  ;;  %v246_v63 = vadd.f32 %v245_v61, %v65_v56  ;;  %v410_v0 = vadd.f32 %v409_v62, %v65_v56 }
  0xdd   :  { %v247_v1 = vpop.f32.mrf.mxu0  ;;  %v411_v2 = vpop.f32.mrf.mxu1 }
  0xde   :  { %304 = vst [vmem:[%s892_s3 + $0x30] sm:$0xff] %v246_v63  ;;  %538 = vst [vmem:[%s892_s3 + $0x100] sm:$0xff] %v410_v0  ;;  %v248_v4 = vadd.f32 %v247_v1, %v65_v56  ;;  %v412_v5 = vadd.f32 %v411_v2, %v65_v56  ;;  %v105_v2 = vpop.permute.xlu1 %104 }
  0xdf   :  { %v251_v6 = vpop.f32.mrf.mxu0  ;;  %v415_v7 = vpop.f32.mrf.mxu1 }
  0xe0   :  { %305 = vst [vmem:[%s892_s3 + $0x38] sm:$0xff] %v248_v4  ;;  %539 = vst [vmem:[%s892_s3 + $0x108] sm:$0xff] %v412_v5  ;;  %v252_v8 = vadd.f32 %v251_v6, %v70_v3  ;;  %v416_v9 = vadd.f32 %v415_v7, %v70_v3 }
  0xe1   :  { %v253_v11 = vpop.f32.mrf.mxu0  ;;  %v417_v12 = vpop.f32.mrf.mxu1 }
  0xe2   :  { %306 = vst [vmem:[%s892_s3 + $0x40] sm:$0xff] %v252_v8  ;;  %540 = vst [vmem:[%s892_s3 + $0x110] sm:$0xff] %v416_v9  ;;  %v254_v13 = vadd.f32 %v253_v11, %v70_v3  ;;  %v418_v14 = vadd.f32 %v417_v12, %v70_v3  ;;  %v110_v11 = vpop.permute.xlu0 %109 }
  0xe3   :  { %v255_v15 = vpop.f32.mrf.mxu0  ;;  %v419_v16 = vpop.f32.mrf.mxu1 }
  0xe4   :  { %307 = vst [vmem:[%s892_s3 + $0x48] sm:$0xff] %v254_v13  ;;  %541 = vst [vmem:[%s892_s3 + $0x118] sm:$0xff] %v418_v14  ;;  %v256_v17 = vadd.f32 %v255_v15, %v75_v10  ;;  %v420_v18 = vadd.f32 %v419_v16, %v75_v10 }
  0xe5   :  { %v257_v19 = vpop.f32.mrf.mxu0  ;;  %v421_v20 = vpop.f32.mrf.mxu1 }
  0xe6   :  { %308 = vst [vmem:[%s892_s3 + $0x50] sm:$0xff] %v256_v17  ;;  %542 = vst [vmem:[%s892_s3 + $0x120] sm:$0xff] %v420_v18  ;;  %v258_v22 = vadd.f32 %v257_v19, %v75_v10  ;;  %v422_v23 = vadd.f32 %v421_v20, %v75_v10 }
  0xe7   :  { %v261_v24 = vpop.f32.mrf.mxu0  ;;  %v425_v25 = vpop.f32.mrf.mxu1 }
  0xe8   :  { %309 = vst [vmem:[%s892_s3 + $0x58] sm:$0xff] %v258_v22  ;;  %543 = vst [vmem:[%s892_s3 + $0x128] sm:$0xff] %v422_v23  ;;  %v262_v26 = vadd.f32 %v261_v24, %v80_v21  ;;  %v426_v27 = vadd.f32 %v425_v25, %v80_v21 }
  0xe9   :  { %v263_v28 = vpop.f32.mrf.mxu0  ;;  %v427_v29 = vpop.f32.mrf.mxu1 }
  0xea   :  { %310 = vst [vmem:[%s892_s3 + $0x60] sm:$0xff] %v262_v26  ;;  %544 = vst [vmem:[%s892_s3 + $0x130] sm:$0xff] %v426_v27  ;;  %v264_v31 = vadd.f32 %v263_v28, %v80_v21  ;;  %v428_v32 = vadd.f32 %v427_v29, %v80_v21 }
  0xeb   :  { %v265_v33 = vpop.f32.mrf.mxu0  ;;  %v429_v34 = vpop.f32.mrf.mxu1 }
  0xec   :  { %311 = vst [vmem:[%s892_s3 + $0x68] sm:$0xff] %v264_v31  ;;  %545 = vst [vmem:[%s892_s3 + $0x138] sm:$0xff] %v428_v32  ;;  %v266_v35 = vadd.f32 %v265_v33, %v85_v30  ;;  %v430_v36 = vadd.f32 %v429_v34, %v85_v30 }
  0xed   :  { %v267_v37 = vpop.f32.mrf.mxu0  ;;  %v431_v38 = vpop.f32.mrf.mxu1 }
  0xee   :  { %312 = vst [vmem:[%s892_s3 + $0x70] sm:$0xff] %v266_v35  ;;  %546 = vst [vmem:[%s892_s3 + $0x140] sm:$0xff] %v430_v36  ;;  %v268_v40 = vadd.f32 %v267_v37, %v85_v30  ;;  %v432_v41 = vadd.f32 %v431_v38, %v85_v30 }
  0xef   :  { %v271_v42 = vpop.f32.mrf.mxu0  ;;  %v435_v43 = vpop.f32.mrf.mxu1 }
  0xf0   :  { %313 = vst [vmem:[%s892_s3 + $0x78] sm:$0xff] %v268_v40  ;;  %547 = vst [vmem:[%s892_s3 + $0x148] sm:$0xff] %v432_v41  ;;  %v272_v44 = vadd.f32 %v271_v42, %v90_v39  ;;  %v436_v45 = vadd.f32 %v435_v43, %v90_v39 }
  0xf1   :  { %v273_v46 = vpop.f32.mrf.mxu0  ;;  %v437_v47 = vpop.f32.mrf.mxu1 }
  0xf2   :  { %314 = vst [vmem:[%s892_s3 + $0x80] sm:$0xff] %v272_v44  ;;  %548 = vst [vmem:[%s892_s3 + $0x150] sm:$0xff] %v436_v45  ;;  %v274_v49 = vadd.f32 %v273_v46, %v90_v39  ;;  %v438_v50 = vadd.f32 %v437_v47, %v90_v39 }
  0xf3   :  { %v275_v51 = vpop.f32.mrf.mxu0  ;;  %v439_v52 = vpop.f32.mrf.mxu1 }
  0xf4   :  { %315 = vst [vmem:[%s892_s3 + $0x88] sm:$0xff] %v274_v49  ;;  %549 = vst [vmem:[%s892_s3 + $0x158] sm:$0xff] %v438_v50  ;;  %v276_v53 = vadd.f32 %v275_v51, %v95_v48  ;;  %v440_v54 = vadd.f32 %v439_v52, %v95_v48 }
  0xf5   :  { %v277_v55 = vpop.f32.mrf.mxu0  ;;  %v441_v56 = vpop.f32.mrf.mxu1 }
  0xf6   :  { %316 = vst [vmem:[%s892_s3 + $0x90] sm:$0xff] %v276_v53  ;;  %550 = vst [vmem:[%s892_s3 + $0x160] sm:$0xff] %v440_v54  ;;  %v278_v58 = vadd.f32 %v277_v55, %v95_v48  ;;  %v442_v59 = vadd.f32 %v441_v56, %v95_v48 }
  0xf7   :  { %v281_v60 = vpop.f32.mrf.mxu0  ;;  %v445_v61 = vpop.f32.mrf.mxu1 }
  0xf8   :  { %317 = vst [vmem:[%s892_s3 + $0x98] sm:$0xff] %v278_v58  ;;  %551 = vst [vmem:[%s892_s3 + $0x168] sm:$0xff] %v442_v59  ;;  %v282_v62 = vadd.f32 %v281_v60, %v100_v57  ;;  %v446_v63 = vadd.f32 %v445_v61, %v100_v57 }
  0xf9   :  { %v283_v0 = vpop.f32.mrf.mxu0  ;;  %v447_v1 = vpop.f32.mrf.mxu1 }
  0xfa   :  { %318 = vst [vmem:[%s892_s3 + $0xa0] sm:$0xff] %v282_v62  ;;  %552 = vst [vmem:[%s892_s3 + $0x170] sm:$0xff] %v446_v63  ;;  %v284_v3 = vadd.f32 %v283_v0, %v100_v57  ;;  %v448_v4 = vadd.f32 %v447_v1, %v100_v57 }
  0xfb   :  { %v285_v5 = vpop.f32.mrf.mxu0  ;;  %v449_v6 = vpop.f32.mrf.mxu1 }
  0xfc   :  { %319 = vst [vmem:[%s892_s3 + $0xa8] sm:$0xff] %v284_v3  ;;  %553 = vst [vmem:[%s892_s3 + $0x178] sm:$0xff] %v448_v4  ;;  %v286_v7 = vadd.f32 %v285_v5, %v105_v2  ;;  %v450_v8 = vadd.f32 %v449_v6, %v105_v2 }
  0xfd   :  { %v287_v9 = vpop.f32.mrf.mxu0  ;;  %v451_v10 = vpop.f32.mrf.mxu1 }
  0xfe   :  { %320 = vst [vmem:[%s892_s3 + $0xb0] sm:$0xff] %v286_v7  ;;  %554 = vst [vmem:[%s892_s3 + $0x180] sm:$0xff] %v450_v8  ;;  %v288_v12 = vadd.f32 %v287_v9, %v105_v2  ;;  %v452_v13 = vadd.f32 %v451_v10, %v105_v2 }
  0xff   :  { %v291_v14 = vpop.f32.mrf.mxu0  ;;  %v455_v15 = vpop.f32.mrf.mxu1 }
 0x100   :  { %321 = vst [vmem:[%s892_s3 + $0xb8] sm:$0xff] %v288_v12  ;;  %555 = vst [vmem:[%s892_s3 + $0x188] sm:$0xff] %v452_v13  ;;  %v292_v16 = vadd.f32 %v291_v14, %v110_v11  ;;  %v456_v17 = vadd.f32 %v455_v15, %v110_v11 }
 0x101   :  { %v293_v18 = vpop.f32.mrf.mxu0  ;;  %v457_v19 = vpop.f32.mrf.mxu1 }
 0x102   :  { %322 = vst [vmem:[%s892_s3 + $0xc0] sm:$0xf] %v292_v16  ;;  %556 = vst [vmem:[%s892_s3 + $0x190] sm:$0xf] %v456_v17  ;;  %v294_v20 = vadd.f32 %v293_v18, %v110_v11  ;;  %v458_v21 = vadd.f32 %v457_v19, %v110_v11 }
 0x103   :  { %v295_v22 = vpop.f32.mrf.mxu0  ;;  %v459_v23 = vpop.f32.mrf.mxu1 }
 0x104   :  { %323 = vst [vmem:[%s892_s3 + $0xc8] sm:$0xf] %v294_v20  ;;  %557 = vst [vmem:[%s892_s3 + $0x198] sm:$0xf] %v458_v21 }
 0x105   :  { %v296_v24 = vpop.f32.mrf.mxu0  ;;  %v460_v25 = vpop.f32.mrf.mxu1 }

</bundles_post_ra>
